<compile_context>
chip_gen: v5e
topology: v5e:2x2
jax: 0.10.0
libtpu: 0.0.40
codegen_flags: <defaults>
</compile_context>

<pallas_src>
import functools

import jax
import jax.numpy as jnp
from jax.experimental import pallas as pl
from jax.experimental.pallas import tpu as pltpu

H = W = 64          # spatial / matmul dims of the attention slab
HP = H + 2          # conv output height (padding=1, kernel=1)
WP = W + 2          # conv output width
_HIGHEST = jax.lax.Precision.HIGHEST


def _make_kernel(inv_scale: float):
    """Builds the fused kernel with 1/scale baked in as a trace-time constant."""

    def attn_conv_kernel(w_ref, b_ref, q_ref, k_ref, v_ref, o_ref):
        # w/b: (1,) SMEM scalars; q/k/v: (64,64) VMEM; o: (66,66) VMEM (full conv output).
        q = q_ref[...]
        if inv_scale != 1.0:                    # static (trace-time) branch
            q = q * jnp.float32(inv_scale)      # fold 1/scale into q pre-MXU

        # qk = q @ k  (MXU, f32-accurate)
        s = jnp.dot(q, k_ref[...], precision=_HIGHEST,
                    preferred_element_type=jnp.float32)

        # Numerically-stable softmax along the last dim (exact divide; the approx
        # reciprocal + Newton variant failed the tolerance check).
        m = jnp.max(s, axis=-1, keepdims=True)
        e = jnp.exp(s - m)
        p = e / jnp.sum(e, axis=-1, keepdims=True)

        # softmax @ v  (MXU)
        attn = jnp.dot(p, v_ref[...], precision=_HIGHEST,
                       preferred_element_type=jnp.float32)

        wgt = w_ref[0]
        bias = b_ref[0]

        # Conv2d(1,1,kernel=1,padding=1): zero-pad then w*x+b, so the 1-pixel border
        # equals the bias.  One full-block bias fill + one interior overwrite keeps the
        # whole (66,66) result inside this single pallas_call (no wrapper pad op).
        o_ref[...] = jnp.full((HP, WP), bias, dtype=jnp.float32)
        o_ref[1:1 + H, 1:1 + W] = wgt * attn + bias

    return attn_conv_kernel


@functools.partial(jax.jit, static_argnums=(3,))
def model_forward(input1, input2, input3, input4, conv_w, conv_b):
    """input1/2/3: (1,1,64,64) f32.  input4: static Python scalar divisor.
    conv_w: (1,1,1,1) f32, conv_b: (1,) f32.  Returns (1,1,66,66) f32.
    (input5 of the PyTorch forward is unused and therefore not taken.)"""
    inv_scale = 1.0 / float(input4)
    w = conv_w.reshape(1).astype(jnp.float32)
    b = conv_b.reshape(1).astype(jnp.float32)

    slab = pl.BlockSpec((None, None, H, W), lambda: (0, 0, 0, 0))
    smem = pl.BlockSpec(memory_space=pltpu.MemorySpace.SMEM)

    return pl.pallas_call(
        _make_kernel(inv_scale),
        out_shape=jax.ShapeDtypeStruct((1, 1, HP, WP), jnp.float32),
        in_specs=[
            smem,   # conv weight (1,)
            smem,   # conv bias (1,)
            slab,   # q
            slab,   # k
            slab,   # v
        ],
        out_specs=pl.BlockSpec((None, None, HP, WP), lambda: (0, 0, 0, 0)),
        cost_estimate=pl.CostEstimate(
            flops=2 * 2 * H * W * W,                     # two 64x64x64 matmuls
            transcendentals=H * W,                       # exp
            bytes_accessed=4 * (3 * H * W + HP * WP)),
    )(w, b, input1, input2, input3)


def reference_forward(input1, input2, input3, input4, conv_w, conv_b):
    """Pure-JAX reference of the PyTorch forward for verification."""
    qk = jnp.matmul(input1, input2, precision=_HIGHEST)
    scaled = qk / input4
    soft = jax.nn.softmax(scaled, axis=-1)
    av = jnp.matmul(soft, input3, precision=_HIGHEST)
    padded = jnp.pad(av, ((0, 0), (0, 0), (1, 1), (1, 1)))
    return conv_w[0, 0, 0, 0] * padded + conv_b[0]


if __name__ == "__main__":
    key = jax.random.PRNGKey(0)
    k1, k2, k3, k4, k5 = jax.random.split(key, 5)

    input1 = jax.random.normal(k1, (1, 1, H, W), dtype=jnp.float32)
    input2 = jax.random.normal(k2, (1, 1, H, W), dtype=jnp.float32)
    input3 = jax.random.normal(k3, (1, 1, H, W), dtype=jnp.float32)
    input4 = 1  # scalar divisor, as in the PyTorch snippet
    # input5 is unused by the forward pass.

    # Deterministic "Conv2d(1,1,1)" parameters (weight (1,1,1,1), bias (1,)).
    conv_w = jax.random.normal(k4, (1, 1, 1, 1), dtype=jnp.float32)
    conv_b = jax.random.normal(k5, (1,), dtype=jnp.float32)

    out = model_forward(input1, input2, input3, input4, conv_w, conv_b)
    out = jax.block_until_ready(out)

    ref = reference_forward(input1, input2, input3, input4, conv_w, conv_b)
    assert out.shape == (1, 1, HP, WP), out.shape
    # 1e-4 leaves headroom for MXU-vs-XLA f32 matmul rounding differences on hardware;
    # in interpret mode the kernel and reference are numerically identical.
    assert jnp.allclose(out, ref, atol=1e-4, rtol=1e-4), "mismatch vs reference"

    print("KERNEL_OK")
</pallas_src>

<mosaic_0001>
module attributes {stable_mosaic.version = 11 : i64} {
  func.func @attn_conv_kernel(%arg0: memref<1xf32, #tpu.memory_space<smem>>, %arg1: memref<1xf32, #tpu.memory_space<smem>>, %arg2: memref<1x1x64x64xf32, #tpu.memory_space<vmem>>, %arg3: memref<1x1x64x64xf32, #tpu.memory_space<vmem>>, %arg4: memref<1x1x64x64xf32, #tpu.memory_space<vmem>>, %arg5: memref<1x1x66x66xf32, #tpu.memory_space<vmem>>) attributes {dimension_semantics = [], scalar_prefetch = 0 : i64, scratch_operands = 0 : i64, tpu.core_type = #tpu.core_type<tc>} {
    %c0 = arith.constant 0 : index
    %c0_0 = arith.constant 0 : index
    %c0_1 = arith.constant 0 : index
    %c0_2 = arith.constant 0 : index
    %0 = vector.load %arg2[%c0, %c0_0, %c0_1, %c0_2] : memref<1x1x64x64xf32, #tpu.memory_space<vmem>>, vector<1x1x64x64xf32>
    %1 = vector.shape_cast %0 : vector<1x1x64x64xf32> to vector<64x64xf32>
    %c0_3 = arith.constant 0 : index
    %c0_4 = arith.constant 0 : index
    %c0_5 = arith.constant 0 : index
    %c0_6 = arith.constant 0 : index
    %2 = vector.load %arg3[%c0_3, %c0_4, %c0_5, %c0_6] : memref<1x1x64x64xf32, #tpu.memory_space<vmem>>, vector<1x1x64x64xf32>
    %3 = vector.shape_cast %2 : vector<1x1x64x64xf32> to vector<64x64xf32>
    %cst = arith.constant dense<0.000000e+00> : vector<64x64xf32>
    %4 = tpu.matmul %1, %3, %cst {dimension_numbers = #tpu.dot_dimension_numbers<[1], [0], [0], [1], [0, 0, 1, 1], [], []>, precision = #tpu.contract_precision<fp32>} : vector<64x64xf32>, vector<64x64xf32>, vector<64x64xf32> -> vector<64x64xf32>
    %cst_7 = arith.constant dense<0xFF800000> : vector<64xf32>
    %5 = vector.multi_reduction <maximumf>, %4, %cst_7 [1] : vector<64x64xf32> to vector<64xf32>
    %6 = vector.shape_cast %5 : vector<64xf32> to vector<64x1xf32>
    %7 = vector.broadcast %6 : vector<64x1xf32> to vector<64x64xf32>
    %8 = arith.subf %4, %7 : vector<64x64xf32>
    %9 = math.exp %8 : vector<64x64xf32>
    %cst_8 = arith.constant dense<0.000000e+00> : vector<64xf32>
    %10 = vector.multi_reduction <add>, %9, %cst_8 [1] : vector<64x64xf32> to vector<64xf32>
    %11 = vector.shape_cast %10 : vector<64xf32> to vector<64x1xf32>
    %12 = vector.broadcast %11 : vector<64x1xf32> to vector<64x64xf32>
    %13 = arith.divf %9, %12 : vector<64x64xf32>
    %c0_9 = arith.constant 0 : index
    %c0_10 = arith.constant 0 : index
    %c0_11 = arith.constant 0 : index
    %c0_12 = arith.constant 0 : index
    %14 = vector.load %arg4[%c0_9, %c0_10, %c0_11, %c0_12] : memref<1x1x64x64xf32, #tpu.memory_space<vmem>>, vector<1x1x64x64xf32>
    %15 = vector.shape_cast %14 : vector<1x1x64x64xf32> to vector<64x64xf32>
    %cst_13 = arith.constant dense<0.000000e+00> : vector<64x64xf32>
    %16 = tpu.matmul %13, %15, %cst_13 {dimension_numbers = #tpu.dot_dimension_numbers<[1], [0], [0], [1], [0, 0, 1, 1], [], []>, precision = #tpu.contract_precision<fp32>} : vector<64x64xf32>, vector<64x64xf32>, vector<64x64xf32> -> vector<64x64xf32>
    %c0_14 = arith.constant 0 : index
    %17 = memref.load %arg0[%c0_14] : memref<1xf32, #tpu.memory_space<smem>>
    %c0_15 = arith.constant 0 : index
    %18 = memref.load %arg1[%c0_15] : memref<1xf32, #tpu.memory_space<smem>>
    %19 = vector.broadcast %18 : f32 to vector<66x66xf32>
    %c0_16 = arith.constant 0 : index
    %c0_17 = arith.constant 0 : index
    %c0_18 = arith.constant 0 : index
    %c0_19 = arith.constant 0 : index
    %20 = vector.load %arg5[%c0_16, %c0_17, %c0_18, %c0_19] : memref<1x1x66x66xf32, #tpu.memory_space<vmem>>, vector<1x1x66x66xf32>
    %21 = vector.shape_cast %20 : vector<1x1x66x66xf32> to vector<66x66xf32>
    %22 = vector.shape_cast %19 : vector<66x66xf32> to vector<1x1x66x66xf32>
    tpu.vector_store %arg5[%c0_16, %c0_17, %c0_18, %c0_19], %22 {strides = array<i32>} : memref<1x1x66x66xf32, #tpu.memory_space<vmem>>, vector<1x1x66x66xf32>,
    %23 = vector.broadcast %17 : f32 to vector<64x64xf32>
    %24 = arith.mulf %23, %16 : vector<64x64xf32>
    %25 = vector.broadcast %18 : f32 to vector<64x64xf32>
    %26 = arith.addf %24, %25 : vector<64x64xf32>
    %c0_20 = arith.constant 0 : index
    %c0_21 = arith.constant 0 : index
    %c1 = arith.constant 1 : index
    %c1_22 = arith.constant 1 : index
    %27 = vector.load %arg5[%c0_20, %c0_21, %c1, %c1_22] : memref<1x1x66x66xf32, #tpu.memory_space<vmem>>, vector<1x1x64x64xf32>
    %28 = vector.shape_cast %27 : vector<1x1x64x64xf32> to vector<64x64xf32>
    %29 = vector.shape_cast %26 : vector<64x64xf32> to vector<1x1x64x64xf32>
    tpu.vector_store %arg5[%c0_20, %c0_21, %c1, %c1_22], %29 {strides = array<i32>} : memref<1x1x66x66xf32, #tpu.memory_space<vmem>>, vector<1x1x64x64xf32>,
    return
  }
}

</mosaic_0001>

<bundles_post_ra>
// kernel: model_forward.1
= control target key start
LH: loop header
LB: loop body
LE: loop exit
PB: predicated region body
PF: predicated region fallthrough
CT: control target
= control target key end

     0   :  { %12 = vsyncpa [#allocation5], 0  ;;  %s1954_s0 = inlined_call_operand.<no memory space> [shape: f32[1], index: 0, kind: input, shape index: {}]   ;;  %s1955_s1 = inlined_call_operand.<no memory space> [shape: f32[1], index: 1, kind: input, shape index: {}]   ;;  %s1956_s2 = inlined_call_operand.hbm [shape: f32[1,1,64,64], index: 2, kind: input, shape index: {}]   ;;  %s1957_s3 = inlined_call_operand.hbm [shape: f32[1,1,64,64], index: 3, kind: input, shape index: {}]   ;;  %s1958_s4 = inlined_call_operand.hbm [shape: f32[1,1,64,64], index: 4, kind: input, shape index: {}]   ;;  %s1959_s5 = inlined_call_operand.vmem [shape: f32[1,1,66,66], index: 5, kind: output, shape index: {}]  }
   0x1   :  { %13 = vsyncpa [#allocation7], 0  ;;  %s35_s20 = sshll.u32 %s1957_s3, 4  ;;  %s1434_s21 = smov [#allocation6]   ;;  %s36_s20 = int_to_ptr.hbm [resolvable:$true] %s35_s20 }
   0x2   :  { %s37_s22 = sshll.u32 %s1434_s21, 4  ;;  %s22_s25 = sshll.u32 %s1956_s2, 4  ;;  %s38_s22 = int_to_ptr.vmem [resolvable:$true] %s37_s22  ;;  %s23_s25 = int_to_ptr.hbm [resolvable:$true] %s22_s25 }
   0x3   :  { %s1435_s26 = smov 128   ;;  %s1436_s27 = smov 8  }
   0x4   :  { %43 = dma.hbm_to_vmem [thread:$0]  %s36_s20, 1024, %s38_s22, [#allocation7], %s1435_s26, %s1435_s26, %s1436_s27  }
   0x5   :  { %s1437_s28 = smov [#allocation4]   ;;  %s48_s7 = sshll.u32 %s1958_s4, 4  ;;  %s49_s7 = int_to_ptr.hbm [resolvable:$true] %s48_s7 }
   0x6   :  { %s24_s29 = sshll.u32 %s1437_s28, 4  ;;  %s1438_s3 = smov [#allocation8]   ;;  %s25_s29 = int_to_ptr.vmem [resolvable:$true] %s24_s29 }
   0x7   :  { %30 = dma.hbm_to_vmem [thread:$0]  %s23_s25, 1024, %s25_s29, [#allocation5], %s1435_s26, %s1435_s26, %s1436_s27  }
   0x8   :  { %s50_s8 = sshll.u32 %s1438_s3, 4  ;;  %s51_s8 = int_to_ptr.vmem [resolvable:$true] %s50_s8 }
   0x9   :  { %56 = dma.hbm_to_vmem [thread:$0]  %s49_s7, 1024, %s51_s8, [#allocation7], %s1435_s26, %s1435_s26, %s1436_s27  }
   0xa   :  { %1430 = dma.done.wait [#allocation5], 1024  }
   0xb   :  { %1431 = vsyncadd [#allocation5], 4294966272 }
   0xc   :  { %1432 = dma.done.wait [#allocation7], 2048  }
   0xd   :  { %1433 = vsyncadd [#allocation7], 4294965248  ;;  %v84_v0 = vld [vmem:[#allocation6 + $0x38] sm:$0xff]  ;;  %v83_v1 = vld [vmem:[#allocation6 + $0x30] sm:$0xff]  ;;  %vm85_vm0 = vcmask 523264   ;;  %s1439_s11 = smov 1  }
   0xe   :  { %v82_v2 = vld [vmem:[#allocation6 + $0x28] sm:$0xff]  ;;  %v1479_v3 = vand.u32 4294901760, %v84_v0  ;;  %v1481_v4 = vand.u32 4294901760, %v83_v1  ;;  %v81_v6 = vld [vmem:[#allocation6 + $0x20] sm:$0xff]  ;;  %v80_v7 = vld [vmem:[#allocation6 + $0x18] sm:$0xff] }
   0xf   :  { %v1483_v5 = vand.u32 4294901760, %v82_v2  ;;  %v79_v8 = vld [vmem:[#allocation6 + $0x10] sm:$0xff]  ;;  %v1485_v9 = vand.u32 4294901760, %v81_v6  ;;  %v1487_v10 = vand.u32 4294901760, %v80_v7  ;;  %v78_v12 = vld [vmem:[#allocation6 + $0x8] sm:$0xff]  ;;  %v77_v13 = vld [vmem:[#allocation6] sm:$0xff] }
  0x10   :  { %v1489_v11 = vand.u32 4294901760, %v79_v8  ;;  %v69_v14 = vld [vmem:[#allocation4] sm:$0xff]  ;;  %119 = vmatpush.msra.mxu0 %v1479_v3  ;;  %v1493_v15 = vsub.f32 %v84_v0, %v1479_v3  ;;  %v1496_v16 = vsub.f32 %v83_v1, %v1481_v4  ;;  %370 = vmatpush.msra.mxu3 %v1479_v3  ;;  %v1502_v18 = vand.u32 4294901760, %v78_v12  ;;  %v70_v36 = vld [vmem:[#allocation4 + $0x8] sm:$0xff]  ;;  %v71_v37 = vld [vmem:[#allocation4 + $0x10] sm:$0xff] }
  0x11   :  { %v1500_v17 = vsub.f32 %v82_v2, %v1483_v5  ;;  %v1505_v19 = vsub.f32 %v81_v6, %v1485_v9  ;;  %v1508_v20 = vsub.f32 %v80_v7, %v1487_v10  ;;  %v1510_v21 = vand.u32 4294901760, %v77_v13  ;;  %v72_v59 = vld [vmem:[#allocation4 + $0x18] sm:$0xff] }
  0x12   :  { %v1513_v22 = vsub.f32 %v79_v8, %v1489_v11  ;;  %121 = vmatpush.msra.mxu0 %v1481_v4  ;;  %298 = vmatpush.msra.mxu2 %v1493_v15  ;;  %v209_v23 = vand.u32 4294901760, %v1493_v15  ;;  %v215_v24 = vand.u32 4294901760, %v1496_v16  ;;  %v87_v26 = vsel %vm85_vm0, %v69_v14, 0 }
  0x13   :  { %v221_v25 = vand.u32 4294901760, %v1500_v17  ;;  %372 = vmatpush.msra.mxu3 %v1481_v4  ;;  %v227_v27 = vand.u32 4294901760, %v1505_v19  ;;  %v1523_v28 = vand.u32 4294901760, %v87_v26  ;;  %v233_v29 = vand.u32 4294901760, %v1508_v20 }
  0x14   :  { %v1527_v30 = vsub.f32 %v78_v12, %v1502_v18  ;;  %123 = vmatpush.msra.mxu0 %v1483_v5  ;;  %301 = vmatpush.msra.mxu2 %v1496_v16  ;;  %v210_v31 = vsub.f32 %v1493_v15, %v209_v23  ;;  %v216_v32 = vsub.f32 %v1496_v16, %v215_v24  ;;  %v239_v35 = vand.u32 4294901760, %v1513_v22  ;;  %v73_v12 = vld [vmem:[#allocation4 + $0x20] sm:$0xff] }
  0x15   :  { %v222_v33 = vsub.f32 %v1500_v17, %v221_v25  ;;  %374 = vmatpush.msra.mxu3 %v1483_v5  ;;  %v135_v34 = vsub.f32 %v87_v26, %v1523_v28  ;;  %v228_v40 = vsub.f32 %v1505_v19, %v227_v27  ;;  %v1549_v41 = vsub.f32 %v77_v13, %v1510_v21 }
  0x16   :  { %125 = vmatpush.msra.mxu0 %v1485_v9  ;;  %v211_v38 = vand.u32 4294901760, %v210_v31  ;;  %304 = vmatpush.msra.mxu2 %v1500_v17  ;;  %v217_v39 = vand.u32 4294901760, %v216_v32  ;;  %v234_v43 = vsub.f32 %v1508_v20, %v233_v29  ;;  %v245_v45 = vand.u32 4294901760, %v1527_v30 }
  0x17   :  { %376 = vmatpush.msra.mxu3 %v1485_v9  ;;  %v136_v42 = vand.u32 4294901760, %v135_v34  ;;  %v223_v44 = vand.u32 4294901760, %v222_v33  ;;  %v90_v46 = vsel %vm85_vm0, %v70_v36, 0  ;;  %v93_v47 = vsel %vm85_vm0, %v71_v37, 0 }
  0x18   :  { %127 = vmatpush.msra.mxu0 %v1487_v10  ;;  %212 = vmatpush.msra.mxu1 %v211_v38  ;;  %v1561_v49 = vand.u32 4294901760, %v90_v46  ;;  %v229_v50 = vand.u32 4294901760, %v228_v40  ;;  %v240_v51 = vsub.f32 %v1513_v22, %v239_v35  ;;  %v251_v52 = vand.u32 4294901760, %v1549_v41 }
  0x19   :  { %307 = vmatpush.msra.mxu2 %v1505_v19  ;;  %378 = vmatpush.msra.mxu3 %v1487_v10  ;;  %v137_v48 = vsub.f32 %v135_v34, %v136_v42  ;;  %v1571_v55 = vand.u32 4294901760, %v93_v47  ;;  %v235_v56 = vand.u32 4294901760, %v234_v43  ;;  %v246_v57 = vsub.f32 %v1527_v30, %v245_v45 }
  0x1a   :  { %129 = vmatpush.msra.mxu0 %v1489_v11  ;;  %218 = vmatpush.msra.mxu1 %v217_v39  ;;  %v143_v54 = vsub.f32 %v90_v46, %v1561_v49  ;;  %v241_v60 = vand.u32 4294901760, %v240_v51  ;;  %v252_v61 = vsub.f32 %v1549_v41, %v251_v52  ;;  %v96_v1 = vsel %vm85_vm0, %v72_v59, 0 }
  0x1b   :  { %310 = vmatpush.msra.mxu2 %v1508_v20  ;;  %v138_v53 = vand.u32 4294901760, %v137_v48  ;;  %380 = vmatpush.msra.mxu3 %v1489_v11  ;;  %v151_v63 = vsub.f32 %v93_v47, %v1571_v55  ;;  %v247_v0 = vand.u32 4294901760, %v246_v57  ;;  %v1590_v8 = vand.u32 4294901760, %v96_v1  ;;  %v75_v20 = vld [vmem:[#allocation4 + $0x30] sm:$0xff] }
  0x1c   :  { %131 = vmatpush.msra.mxu0 %v1502_v18  ;;  %224 = vmatpush.msra.mxu1 %v223_v44  ;;  %v144_v58 = vand.u32 4294901760, %v143_v54  ;;  %v253_v2 = vand.u32 4294901760, %v252_v61  ;;  %v99_v15 = vsel %vm85_vm0, %v73_v12, 0 }
  0x1d   :  { %313 = vmatpush.msra.mxu2 %v1513_v22  ;;  %382 = vmatpush.msra.mxu3 %v1502_v18  ;;  %v152_v7 = vand.u32 4294901760, %v151_v63  ;;  %v159_v14 = vsub.f32 %v96_v1, %v1590_v8 }
  0x1e   :  { %133 = vmatpush.msra.mxu0 %v1510_v21  ;;  %230 = vmatpush.msra.mxu1 %v229_v50  ;;  %v145_v62 = vsub.f32 %v143_v54, %v144_v58 }
  0x1f   :  { %139 = vmatmul.f32.vlgmr.msra.gmra.mxu0 %v138_v53  ;;  %316 = vmatpush.msra.mxu2 %v1527_v30  ;;  %v153_v13 = vsub.f32 %v151_v63, %v152_v7  ;;  %v76_v30 = vld [vmem:[#allocation4 + $0x38] sm:$0xff] }
  0x20   :  { %236 = vmatpush.msra.mxu1 %v235_v56  ;;  %384 = vmatpush.msra.mxu3 %v1510_v21  ;;  %v146_v6 = vand.u32 4294901760, %v145_v62 }
  0x21   :  { %319 = vmatpush.msra.mxu2 %v1549_v41  ;;  %388 = vmatmul.f32.vlgmr.msra.gmra.mxu3 %v136_v42  ;;  %v154_v16 = vand.u32 4294901760, %v153_v13 }
  0x22   :  { %242 = vmatpush.msra.mxu1 %v241_v60  ;;  %322 = vmatmul.f32.vlgmr.msra.gmra.mxu2 %v135_v34 }
  0x23   :  { %445 = vmatpush.msrb.mxu0 %v209_v23  ;;  %v160_v23 = vand.u32 4294901760, %v159_v14 }
  0x24   :  { %248 = vmatpush.msra.mxu1 %v247_v0 }
  0x25   :  { %449 = vmatpush.msrb.mxu0 %v215_v24  ;;  %v1603_v24 = vand.u32 4294901760, %v99_v15  ;;  %v161_v17 = vsub.f32 %v159_v14, %v160_v23 }
  0x26   :  { %254 = vmatpush.msra.mxu1 %v253_v2 }
  0x27   :  { %147 = vmatmul.f32.gmra.mxu0 %v146_v6  ;;  %256 = vmatmul.f32.vlgmr.msra.gmra.mxu1 %v1523_v28 }
  0x28   :  { %516 = vmatpush.msrb.mxu1 %v1479_v3  ;;  %453 = vmatpush.msrb.mxu0 %v221_v25  ;;  %v74_v3 = vld [vmem:[#allocation4 + $0x28] sm:$0xff] }
  0x29   :  { %394 = vmatmul.f32.gmra.mxu3 %v144_v58  ;;  %v102_v25 = vsel %vm85_vm0, %v74_v3, 0 }
  0x2a   :  { %327 = vmatmul.f32.gmra.mxu2 %v143_v54  ;;  %518 = vmatpush.msrb.mxu1 %v1481_v4  ;;  %v167_v4 = vsub.f32 %v99_v15, %v1603_v24 }
  0x2b   :  { %457 = vmatpush.msrb.mxu0 %v227_v27 }
  0x2c   :  { %520 = vmatpush.msrb.mxu1 %v1483_v5  ;;  %v162_v5 = vand.u32 4294901760, %v161_v17  ;;  %v168_v19 = vand.u32 4294901760, %v167_v4 }
  0x2d   :  { %461 = vmatpush.msrb.mxu0 %v233_v29 }
  0x2e   :  { %522 = vmatpush.msrb.mxu1 %v1485_v9  ;;  %v174_v9 = vand.u32 4294901760, %v102_v25 }
  0x2f   :  { %155 = vmatmul.f32.gmra.mxu0 %v154_v16  ;;  %260 = vmatmul.f32.gmra.mxu1 %v1561_v49 }
  0x30   :  { %524 = vmatpush.msrb.mxu1 %v1487_v10  ;;  %465 = vmatpush.msrb.mxu0 %v239_v35  ;;  %v169_v10 = vsub.f32 %v167_v4, %v168_v19  ;;  %v175_v22 = vsub.f32 %v102_v25, %v174_v9 }
  0x31   :  { %400 = vmatmul.f32.gmra.mxu3 %v152_v7 }
  0x32   :  { %332 = vmatmul.f32.gmra.mxu2 %v151_v63  ;;  %526 = vmatpush.msrb.mxu1 %v1489_v11  ;;  %v105_v11 = vsel %vm85_vm0, %v75_v20, 0  ;;  %v170_v26 = vand.u32 4294901760, %v169_v10  ;;  %v176_v27 = vand.u32 4294901760, %v175_v22 }
  0x33   :  { %469 = vmatpush.msrb.mxu0 %v245_v45  ;;  %v182_v29 = vand.u32 4294901760, %v105_v11 }
  0x34   :  { %528 = vmatpush.msrb.mxu1 %v1502_v18  ;;  %v177_v18 = vsub.f32 %v175_v22, %v176_v27 }
  0x35   :  { %473 = vmatpush.msrb.mxu0 %v251_v52  ;;  %v183_v31 = vsub.f32 %v105_v11, %v182_v29 }
  0x36   :  { %530 = vmatpush.msrb.mxu1 %v1510_v21  ;;  %v108_v21 = vsel %vm85_vm0, %v76_v30, 0  ;;  %v178_v32 = vand.u32 4294901760, %v177_v18 }
  0x37   :  { %163 = vmatmul.f32.gmra.mxu0 %v162_v5  ;;  %264 = vmatmul.f32.gmra.mxu1 %v1571_v55  ;;  %v184_v33 = vand.u32 4294901760, %v183_v31  ;;  %v190_v34 = vand.u32 4294901760, %v108_v21 }
  0x39   :  { %406 = vmatmul.f32.gmra.mxu3 %v160_v23  ;;  %v185_v35 = vsub.f32 %v183_v31, %v184_v33  ;;  %v191_v36 = vsub.f32 %v108_v21, %v190_v34 }
  0x3a   :  { %337 = vmatmul.f32.gmra.mxu2 %v159_v14 }
  0x3b   :  { %v186_v37 = vand.u32 4294901760, %v185_v35  ;;  %v192_v38 = vand.u32 4294901760, %v191_v36 }
  0x3d   :  { %v193_v39 = vsub.f32 %v191_v36, %v192_v38 }
  0x3f   :  { %171 = vmatmul.f32.gmra.mxu0 %v170_v26  ;;  %268 = vmatmul.f32.gmra.mxu1 %v1590_v8  ;;  %v194_v40 = vand.u32 4294901760, %v193_v39 }
  0x41   :  { %412 = vmatmul.f32.gmra.mxu3 %v168_v19 }
  0x42   :  { %342 = vmatmul.f32.gmra.mxu2 %v167_v4 }
  0x47   :  { %179 = vmatmul.f32.gmra.mxu0 %v178_v32  ;;  %272 = vmatmul.f32.gmra.mxu1 %v1603_v24 }
  0x49   :  { %418 = vmatmul.f32.gmra.mxu3 %v176_v27 }
  0x4a   :  { %347 = vmatmul.f32.gmra.mxu2 %v175_v22 }
  0x4f   :  { %187 = vmatmul.f32.gmra.mxu0 %v186_v37  ;;  %276 = vmatmul.f32.gmra.mxu1 %v174_v9 }
  0x51   :  { %424 = vmatmul.f32.gmra.mxu3 %v184_v33 }
  0x52   :  { %352 = vmatmul.f32.gmra.mxu2 %v183_v31 }
  0x57   :  { %195 = vmatmul.f32.gmra.mxu0 %v194_v40  ;;  %280 = vmatmul.f32.gmra.mxu1 %v182_v29 }
  0x59   :  { %430 = vmatmul.f32.gmra.mxu3 %v192_v38 }
  0x5a   :  { %357 = vmatmul.f32.gmra.mxu2 %v191_v36 }
  0x5f   :  { %284 = vmatmul.f32.gmra.mxu1 %v190_v34  ;;  %475 = vmatmul.f32.vlgmr.msrb.gmra.mxu0 %v1523_v28 }
  0x67   :  { %479 = vmatmul.f32.gmra.mxu0 %v1561_v49  ;;  %532 = vmatmul.f32.vlgmr.msrb.gmra.mxu1 %v1523_v28 }
  0x6f   :  { %483 = vmatmul.f32.gmra.mxu0 %v1571_v55  ;;  %536 = vmatmul.f32.gmra.mxu1 %v1561_v49 }
  0x77   :  { %487 = vmatmul.f32.gmra.mxu0 %v1590_v8  ;;  %540 = vmatmul.f32.gmra.mxu1 %v1571_v55 }
  0x7f   :  { %491 = vmatmul.f32.gmra.mxu0 %v1603_v24  ;;  %544 = vmatmul.f32.gmra.mxu1 %v1590_v8 }
  0x87   :  { %495 = vmatmul.f32.gmra.mxu0 %v174_v9  ;;  %548 = vmatmul.f32.gmra.mxu1 %v1603_v24 }
  0x8f   :  { %499 = vmatmul.f32.gmra.mxu0 %v182_v29  ;;  %552 = vmatmul.f32.gmra.mxu1 %v174_v9 }
  0x97   :  { %503 = vmatmul.f32.gmra.mxu0 %v190_v34  ;;  %556 = vmatmul.f32.gmra.mxu1 %v182_v29 }
  0x9c   :  { %v140_v28 = vpop.f32.mrf.mxu0 }
  0x9f   :  { %560 = vmatmul.f32.gmra.mxu1 %v190_v34 }
  0xa4   :  { %v148_v41 = vpop.f32.mrf.mxu0  ;;  %v257_v42 = vpop.f32.mrf.mxu1 }
  0xa5   :  { %v323_v51 = vpop.f32.mrf.mxu2  ;;  %v389_v54 = vpop.f32.mrf.mxu3  ;;  %v258_v58 = vadd.f32 %v257_v42, %v140_v28 }
  0xa7   :  { %v324_v62 = vadd.f32 %v323_v51, %v258_v58 }
  0xa9   :  { %v390_v0 = vadd.f32 %v389_v54, %v324_v62 }
  0xac   :  { %v156_v43 = vpop.f32.mrf.mxu0  ;;  %v261_v44 = vpop.f32.mrf.mxu1 }
  0xad   :  { %v328_v57 = vpop.f32.mrf.mxu2  ;;  %v395_v59 = vpop.f32.mrf.mxu3  ;;  %v262_v1 = vadd.f32 %v261_v44, %v148_v41 }
  0xaf   :  { %v329_v12 = vadd.f32 %v328_v57, %v262_v1 }
  0xb1   :  { %v396_v15 = vadd.f32 %v395_v59, %v329_v12 }
  0xb4   :  { %v164_v45 = vpop.f32.mrf.mxu0  ;;  %v265_v46 = vpop.f32.mrf.mxu1 }
  0xb5   :  { %v333_v63 = vpop.f32.mrf.mxu2  ;;  %v401_v2 = vpop.f32.mrf.mxu3  ;;  %v266_v16 = vadd.f32 %v265_v46, %v156_v43 }
  0xb7   :  { %v334_v4 = vadd.f32 %v333_v63, %v266_v16 }
  0xb9   :  { %v402_v9 = vadd.f32 %v401_v2, %v334_v4 }
  0xbc   :  { %v172_v47 = vpop.f32.mrf.mxu0  ;;  %v269_v48 = vpop.f32.mrf.mxu1 }
  0xbd   :  { %v338_v23 = vpop.f32.mrf.mxu2  ;;  %v407_v5 = vpop.f32.mrf.mxu3  ;;  %v270_v20 = vadd.f32 %v269_v48, %v164_v45 }
  0xbf   :  { %v339_v27 = vadd.f32 %v338_v23, %v270_v20 }
  0xc1   :  { %v408_v31 = vadd.f32 %v407_v5, %v339_v27 }
  0xc4   :  { %v180_v49 = vpop.f32.mrf.mxu0  ;;  %v273_v50 = vpop.f32.mrf.mxu1 }
  0xc5   :  { %v343_v10 = vpop.f32.mrf.mxu2  ;;  %v413_v18 = vpop.f32.mrf.mxu3  ;;  %v274_v21 = vadd.f32 %v273_v50, %v172_v47 }
  0xc7   :  { %v344_v35 = vadd.f32 %v343_v10, %v274_v21 }
  0xc9   :  { %v414_v39 = vadd.f32 %v413_v18, %v344_v35 }
  0xcc   :  { %v1637_v52 = vpop.f32.mrf.mxu0  ;;  %v277_v53 = vpop.f32.mrf.mxu1 }
  0xcd   :  { %v348_v37 = vpop.f32.mrf.mxu2  ;;  %v278_v40 = vadd.f32 %v277_v53, %v180_v49  ;;  %v419_v28 = vpop.f32.mrf.mxu3 }
  0xcf   :  { %v349_v44 = vadd.f32 %v348_v37, %v278_v40 }
  0xd1   :  { %v420_v48 = vadd.f32 %v419_v28, %v349_v44 }
  0xd4   :  { %v1639_v55 = vpop.f32.mrf.mxu0  ;;  %v281_v56 = vpop.f32.mrf.mxu1 }
  0xd5   :  { %v353_v47 = vpop.f32.mrf.mxu2  ;;  %v282_v50 = vadd.f32 %v281_v56, %v1637_v52  ;;  %v425_v54 = vpop.f32.mrf.mxu3 }
  0xd7   :  { %v354_v58 = vadd.f32 %v353_v47, %v282_v50 }
  0xdc   :  { %v1641_v60 = vpop.f32.mrf.mxu1  ;;  %v476_v61 = vpop.f32.mrf.mxu0 }
  0xdd   :  { %v477_v6 = vadd.f32 %v476_v61, %v390_v0  ;;  %v426_v61 = vadd.f32 %v425_v54, %v354_v58  ;;  %v286_v62 = vadd.f32 %v1641_v60, %v1639_v55  ;;  %v358_v63 = vpop.f32.mrf.mxu2  ;;  %v431_v56 = vpop.f32.mrf.mxu3  ;;  %v759_v54 = vld [vmem:[#allocation8 + $0x18] sm:$0xff] }
  0xdf   :  { %v359_v2 = vadd.f32 %v358_v63, %v286_v62  ;;  %v1745_v63 = vand.u32 4294901760, %v759_v54 }
  0xe4   :  { %v480_v7 = vpop.f32.mrf.mxu0  ;;  %v533_v8 = vpop.f32.mrf.mxu1 }
  0xe5   :  { %v1643_v13 = vadd.f32 %v533_v8, %v477_v6  ;;  %v481_v24 = vadd.f32 %v480_v7, %v396_v15  ;;  %v432_v8 = vadd.f32 %v431_v56, %v359_v2 }
  0xe7   :  { %v564_v14 = vsel %vm85_vm0, %v1643_v13, -inf }
  0xe8   :  { %565 = vmax.xlane.f32.xlu0 %v564_v14 }
  0xec   :  { %v484_v3 = vpop.f32.mrf.mxu0  ;;  %v537_v17 = vpop.f32.mrf.mxu1 }
  0xed   :  { %v1647_v25 = vadd.f32 %v537_v17, %v481_v24  ;;  %v485_v22 = vadd.f32 %v484_v3, %v402_v9 }
  0xef   :  { %v567_v19 = vsel %vm85_vm0, %v1647_v25, -inf }
  0xf0   :  { %568 = vmax.xlane.f32.xlu0 %v567_v19 }
  0xf4   :  { %v488_v11 = vpop.f32.mrf.mxu0  ;;  %v541_v26 = vpop.f32.mrf.mxu1 }
  0xf5   :  { %v1651_v29 = vadd.f32 %v541_v26, %v485_v22  ;;  %v489_v32 = vadd.f32 %v488_v11, %v408_v31 }
  0xf7   :  { %v570_v30 = vsel %vm85_vm0, %v1651_v29, -inf }
  0xf8   :  { %571 = vmax.xlane.f32.xlu1 %v570_v30 }
  0xfc   :  { %v492_v33 = vpop.f32.mrf.mxu0  ;;  %v545_v34 = vpop.f32.mrf.mxu1 }
  0xfd   :  { %v1655_v36 = vadd.f32 %v545_v34, %v489_v32  ;;  %v493_v41 = vadd.f32 %v492_v33, %v414_v39  ;;  %v763_v32 = vld [vmem:[#allocation8 + $0x38] sm:$0xff]  ;;  %v762_v33 = vld [vmem:[#allocation8 + $0x30] sm:$0xff]  ;;  %v761_v34 = vld [vmem:[#allocation8 + $0x28] sm:$0xff] }
  0xfe   :  { %v1695_v35 = vand.u32 4294901760, %v763_v32  ;;  %v1699_v37 = vand.u32 4294901760, %v761_v34 }
  0xff   :  { %v573_v38 = vsel %vm85_vm0, %v1655_v36, -inf }
 0x100   :  { %574 = vmax.xlane.f32.xlu1 %v573_v38  ;;  %v760_v38 = vld [vmem:[#allocation8 + $0x20] sm:$0xff]  ;;  %797 = vmatpush.msrb.mxu2 %v1695_v35  ;;  %v1705_v28 = vsub.f32 %v763_v32, %v1695_v35 }
 0x101   :  { %v1701_v39 = vand.u32 4294901760, %v760_v38  ;;  %1048 = vmatpush.msra.mxu1 %v1695_v35 }
 0x102   :  { %976 = vmatpush.msra.mxu0 %v1705_v28 }
 0x103   :  { %v1716_v44 = vsub.f32 %v760_v38, %v1701_v39 }
 0x104   :  { %v496_v42 = vpop.f32.mrf.mxu0  ;;  %v549_v43 = vpop.f32.mrf.mxu1 }
 0x105   :  { %v550_v45 = vadd.f32 %v549_v43, %v493_v41  ;;  %v497_v51 = vadd.f32 %v496_v42, %v420_v48  ;;  %v1711_v42 = vsub.f32 %v761_v34, %v1699_v37 }
 0x107   :  { %v576_v46 = vsel %vm85_vm0, %v550_v45, -inf  ;;  %v899_v47 = vand.u32 4294901760, %v1711_v42 }
 0x108   :  { %577 = vmax.xlane.f32.xlu2 %v576_v46 }
 0x10c   :  { %v553_v57 = vpop.f32.mrf.mxu1  ;;  %v500_v49 = vpop.f32.mrf.mxu0 }
 0x10d   :  { %v1661_v59 = vadd.f32 %v553_v57, %v497_v51  ;;  %v501_v0 = vadd.f32 %v500_v49, %v426_v61  ;;  %v905_v51 = vand.u32 4294901760, %v1716_v44  ;;  %v900_v49 = vsub.f32 %v1711_v42, %v899_v47 }
 0x10f   :  { %v579_v53 = vsel %vm85_vm0, %v1661_v59, -inf  ;;  %v906_v62 = vsub.f32 %v1716_v44, %v905_v51 }
 0x110   :  { %580 = vmax.xlane.f32.xlu2 %v579_v53 }
 0x111   :  { %v907_v56 = vand.u32 4294901760, %v906_v62 }
 0x114   :  { %v557_v1 = vpop.f32.mrf.mxu1  ;;  %v504_v7 = vpop.f32.mrf.mxu0 }
 0x115   :  { %v1667_v52 = vadd.f32 %v557_v1, %v501_v0  ;;  %v505_v12 = vadd.f32 %v504_v7, %v432_v8  ;;  %v901_v1 = vand.u32 4294901760, %v900_v49 }
 0x117   :  { %v582_v6 = vsel %vm85_vm0, %v1667_v52, -inf }
 0x118   :  { %583 = vmax.xlane.f32.xlu0 %v582_v6 }
 0x11c   :  { %v561_v14 = vpop.f32.mrf.mxu1 }
 0x11d   :  { %v1671_v15 = vadd.f32 %v561_v14, %v505_v12 }
 0x11f   :  { %v585_v55 = vsel %vm85_vm0, %v1671_v15, -inf }
 0x120   :  { %586 = vmax.xlane.f32.xlu2 %v585_v55 }
 0x15b   :  { %v566_v60 = vpop.xlane.xlu0 %565 }
 0x15c   :  { %v588_v16 = vsub.f32 %v1643_v13, %v566_v60 }
 0x15e   :  { %v596_v23 = vmul.f32 1.442695, %v588_v16 }
 0x160   :  { %1326 = vpow2.f32 %v596_v23 }
 0x163   :  { %v569_v24 = vpop.xlane.xlu0 %568 }
 0x164   :  { %v589_v3 = vsub.f32 %v1647_v25, %v569_v24  ;;  %v758_v24 = vld [vmem:[#allocation8 + $0x10] sm:$0xff] }
 0x166   :  { %v1677_v17 = vpop.eup %1326  ;;  %v598_v4 = vmul.f32 1.442695, %v589_v3  ;;  %v910_v3 = vsub.f32 %v759_v54, %v1745_v63 }
 0x167   :  { %v612_v5 = vsel %vm85_vm0, %v1677_v17, 0.0 }
 0x168   :  { %1328 = vpow2.f32 %v598_v4  ;;  %613 = vadd.xlane.f32.xlu1 %v612_v5  ;;  %v806_v4 = vand.u32 4294901760, %v758_v24  ;;  %v757_v5 = vld [vmem:[#allocation8 + $0x8] sm:$0xff] }
 0x16b   :  { %v572_v19 = vpop.xlane.xlu1 %571 }
 0x16c   :  { %v590_v9 = vsub.f32 %v1651_v29, %v572_v19  ;;  %v916_v19 = vsub.f32 %v758_v24, %v806_v4 }
 0x16e   :  { %v1682_v20 = vpop.eup %1328  ;;  %v600_v10 = vmul.f32 1.442695, %v590_v9  ;;  %v808_v9 = vand.u32 4294901760, %v757_v5 }
 0x16f   :  { %v615_v13 = vsel %vm85_vm0, %v1682_v20, 0.0 }
 0x170   :  { %1330 = vpow2.f32 %v600_v10  ;;  %616 = vadd.xlane.f32.xlu0 %v615_v13  ;;  %v917_v13 = vand.u32 4294901760, %v916_v19 }
 0x173   :  { %v575_v25 = vpop.xlane.xlu1 %574 }
 0x174   :  { %v591_v22 = vsub.f32 %v1655_v36, %v575_v25  ;;  %v1697_v36 = vand.u32 4294901760, %v762_v33  ;;  %v756_v25 = vld [vmem:[#allocation8] sm:$0xff] }
 0x176   :  { %v1687_v11 = vpop.eup %1330  ;;  %v602_v26 = vmul.f32 1.442695, %v591_v22  ;;  %v1708_v41 = vsub.f32 %v762_v33, %v1697_v36  ;;  %799 = vmatpush.msrb.mxu2 %v1697_v36  ;;  %1050 = vmatpush.msra.mxu1 %v1697_v36  ;;  %v922_v22 = vsub.f32 %v757_v5, %v808_v9 }
 0x177   :  { %v618_v27 = vsel %vm85_vm0, %v1687_v11, 0.0 }
 0x178   :  { %1332 = vpow2.f32 %v602_v26  ;;  %619 = vadd.xlane.f32.xlu1 %v618_v27  ;;  %v893_v46 = vand.u32 4294901760, %v1708_v41  ;;  %801 = vmatpush.msrb.mxu2 %v1699_v37  ;;  %v810_v26 = vand.u32 4294901760, %v756_v25 }
 0x179   :  { %979 = vmatpush.msra.mxu0 %v1708_v41  ;;  %1052 = vmatpush.msra.mxu1 %v1699_v37 }
 0x17a   :  { %803 = vmatpush.msrb.mxu2 %v1701_v39 }
 0x17b   :  { %v578_v29 = vpop.xlane.xlu2 %577  ;;  %982 = vmatpush.msra.mxu0 %v1711_v42  ;;  %1054 = vmatpush.msra.mxu1 %v1701_v39 }
 0x17c   :  { %v592_v30 = vsub.f32 %v550_v45, %v578_v29  ;;  %v887_v45 = vand.u32 4294901760, %v1705_v28  ;;  %805 = vmatpush.msrb.mxu2 %v1745_v63  ;;  %v918_v29 = vsub.f32 %v916_v19, %v917_v13 }
 0x17d   :  { %985 = vmatpush.msra.mxu0 %v1716_v44  ;;  %1056 = vmatpush.msra.mxu1 %v1745_v63 }
 0x17e   :  { %v1691_v18 = vpop.eup %1332  ;;  %v604_v31 = vmul.f32 1.442695, %v592_v30  ;;  %v888_v58 = vsub.f32 %v1705_v28, %v887_v45  ;;  %807 = vmatpush.msrb.mxu2 %v806_v4  ;;  %v923_v30 = vand.u32 4294901760, %v922_v22 }
 0x17f   :  { %v621_v21 = vsel %vm85_vm0, %v1691_v18, 0.0  ;;  %988 = vmatpush.msra.mxu0 %v910_v3  ;;  %1058 = vmatpush.msra.mxu1 %v806_v4 }
 0x180   :  { %1334 = vpow2.f32 %v604_v31  ;;  %622 = vadd.xlane.f32.xlu2 %v621_v21  ;;  %v889_v53 = vand.u32 4294901760, %v888_v58  ;;  %809 = vmatpush.msrb.mxu2 %v808_v9  ;;  %v928_v31 = vsub.f32 %v756_v25, %v810_v26  ;;  %v919_v21 = vand.u32 4294901760, %v918_v29 }
 0x181   :  { %991 = vmatpush.msra.mxu0 %v916_v19  ;;  %1060 = vmatpush.msra.mxu1 %v808_v9  ;;  %v924_v32 = vsub.f32 %v922_v22, %v923_v30 }
 0x182   :  { %890 = vmatpush.msrb.mxu3 %v889_v53  ;;  %811 = vmatpush.msrb.mxu2 %v810_v26  ;;  %v929_v33 = vand.u32 4294901760, %v928_v31 }
 0x183   :  { %v581_v40 = vpop.xlane.xlu2 %580  ;;  %994 = vmatpush.msra.mxu0 %v922_v22  ;;  %1062 = vmatpush.msra.mxu1 %v810_v26  ;;  %v925_v34 = vand.u32 4294901760, %v924_v32 }
 0x184   :  { %v593_v43 = vsub.f32 %v1661_v59, %v581_v40  ;;  %v894_v59 = vsub.f32 %v1708_v41, %v893_v46  ;;  %1123 = vmatpush.msra.mxu2 %v887_v45  ;;  %v930_v38 = vsub.f32 %v928_v31, %v929_v33 }
 0x185   :  { %997 = vmatpush.msra.mxu0 %v928_v31 }
 0x186   :  { %v1723_v48 = vpop.eup %1334  ;;  %v606_v50 = vmul.f32 1.442695, %v593_v43  ;;  %v895_v61 = vand.u32 4294901760, %v894_v59  ;;  %1127 = vmatpush.msra.mxu2 %v893_v46  ;;  %v931_v40 = vand.u32 4294901760, %v930_v38 }
 0x187   :  { %v624_v57 = vsel %vm85_vm0, %v1723_v48, 0.0 }
 0x188   :  { %1336 = vpow2.f32 %v606_v50  ;;  %625 = vadd.xlane.f32.xlu0 %v624_v57  ;;  %896 = vmatpush.msrb.mxu3 %v895_v61 }
 0x189   :  { %1131 = vmatpush.msra.mxu2 %v899_v47 }
 0x18a   :  { %902 = vmatpush.msrb.mxu3 %v901_v1 }
 0x18b   :  { %v584_v0 = vpop.xlane.xlu0 %583  ;;  %1135 = vmatpush.msra.mxu2 %v905_v51 }
 0x18c   :  { %v594_v2 = vsub.f32 %v1667_v52, %v584_v0  ;;  %908 = vmatpush.msrb.mxu3 %v907_v56 }
 0x18e   :  { %v1753_v6 = vpop.eup %1336  ;;  %v608_v7 = vmul.f32 1.442695, %v594_v2 }
 0x18f   :  { %v627_v8 = vsel %vm85_vm0, %v1753_v6, 0.0 }
 0x190   :  { %1338 = vpow2.f32 %v608_v7  ;;  %628 = vadd.xlane.f32.xlu1 %v627_v8 }
 0x193   :  { %v587_v12 = vpop.xlane.xlu2 %586 }
 0x194   :  { %v595_v14 = vsub.f32 %v1671_v15, %v587_v12  ;;  %v911_v15 = vand.u32 4294901760, %v910_v3 }
 0x196   :  { %v1758_v52 = vpop.eup %1338  ;;  %v610_v55 = vmul.f32 1.442695, %v595_v14  ;;  %v912_v10 = vsub.f32 %v910_v3, %v911_v15  ;;  %1139 = vmatpush.msra.mxu2 %v911_v15 }
 0x197   :  { %v630_v60 = vsel %vm85_vm0, %v1758_v52, 0.0 }
 0x198   :  { %1340 = vpow2.f32 %v610_v55  ;;  %631 = vadd.xlane.f32.xlu2 %v630_v60  ;;  %v913_v27 = vand.u32 4294901760, %v912_v10  ;;  %1143 = vmatpush.msra.mxu2 %v917_v13 }
 0x19a   :  { %914 = vmatpush.msrb.mxu3 %v913_v27  ;;  %1147 = vmatpush.msra.mxu2 %v923_v30 }
 0x19c   :  { %920 = vmatpush.msrb.mxu3 %v919_v21  ;;  %1151 = vmatpush.msra.mxu2 %v929_v33 }
 0x19e   :  { %v1762_v16 = vpop.eup %1340  ;;  %926 = vmatpush.msrb.mxu3 %v925_v34 }
 0x19f   :  { %v633_v23 = vsel %vm85_vm0, %v1762_v16, 0.0 }
 0x1a0   :  { %634 = vadd.xlane.f32.xlu0 %v633_v23  ;;  %932 = vmatpush.msrb.mxu3 %v931_v40 }
 0x1a2   :  { %1194 = vmatpush.msra.mxu3 %v1695_v35 }
 0x1a4   :  { %1196 = vmatpush.msra.mxu3 %v1697_v36 }
 0x1a6   :  { %1198 = vmatpush.msra.mxu3 %v1699_v37 }
 0x1a8   :  { %1200 = vmatpush.msra.mxu3 %v1701_v39 }
 0x1aa   :  { %1202 = vmatpush.msra.mxu3 %v1745_v63 }
 0x1ac   :  { %1204 = vmatpush.msra.mxu3 %v806_v4 }
 0x1ae   :  { %1206 = vmatpush.msra.mxu3 %v808_v9 }
 0x1b0   :  { %1208 = vmatpush.msra.mxu3 %v810_v26 }
 0x1db   :  { %v614_v28 = vpop.xlane.xlu1 %613 }
 0x1dc   :  { %1342 = vrcp.f32 %v614_v28  ;;  %v647_v36 = vand.u32 2147483648, %v614_v28  ;;  %v645_v37 = vand.u32 2147483647, %v614_v28  ;;  %vm641_vm2 = vweird.f32 %v614_v28 }
 0x1de   :  { %v648_v46 = vor.u32 1.1754944e-38, %v647_v36  ;;  %vm646_vm4 = vcmp.eq.f32.partialorder %v645_v37, 8.507059e+37 }
 0x1e2   :  { %v1343_v41 = vpop.eup %1342 }
 0x1e3   :  { %v637_v42 = vmul.f32 %v1343_v41, %v614_v28  ;;  %v617_v35 = vpop.xlane.xlu0 %616  ;;  %vm642_vm1 = vweird.f32 %v1343_v41 }
 0x1e4   :  { %1344 = vrcp.f32 %v617_v35  ;;  %vm643_vm3 = vmor %vm641_vm2, %vm642_vm1  ;;  %v662_v59 = vand.u32 2147483648, %v617_v35  ;;  %v660_v53 = vand.u32 2147483647, %v617_v35  ;;  %vm656_vm6 = vweird.f32 %v617_v35 }
 0x1e5   :  { %v638_v43 = vsub.f32 1.0, %v637_v42 }
 0x1e6   :  { %v663_v1 = vor.u32 1.1754944e-38, %v662_v59  ;;  %vm661_vm8 = vcmp.eq.f32.partialorder %v660_v53, 8.507059e+37 }
 0x1e7   :  { %v639_v44 = vmul.f32 %v1343_v41, %v638_v43 }
 0x1e9   :  { %v640_v45 = vadd.f32 %v1343_v41, %v639_v44 }
 0x1ea   :  { %v1345_v39 = vpop.eup %1344 }
 0x1eb   :  { %v644_v47 = vsel %vm643_vm3, %v1343_v41, %v640_v45  ;;  %v652_v50 = vmul.f32 %v1345_v39, %v617_v35  ;;  %v620_v51 = vpop.xlane.xlu1 %619  ;;  %vm657_vm5 = vweird.f32 %v1345_v39 }
 0x1ec   :  { %v649_v54 = vsel %vm646_vm4, %v648_v46, %v644_v47  ;;  %1346 = vrcp.f32 %v620_v51  ;;  %vm658_vm7 = vmor %vm656_vm6, %vm657_vm5  ;;  %v675_v60 = vand.u32 2147483647, %v620_v51  ;;  %v677_v23 = vand.u32 2147483648, %v620_v51 }
 0x1ed   :  { %v653_v57 = vsub.f32 1.0, %v652_v50  ;;  %v650_v58 = vmul.f32 %v1677_v17, %v649_v54  ;;  %vm671_vm10 = vweird.f32 %v620_v51 }
 0x1ee   :  { %v678_v10 = vor.u32 1.1754944e-38, %v677_v23  ;;  %vm676_vm12 = vcmp.eq.f32.partialorder %v675_v60, 8.507059e+37 }
 0x1ef   :  { %v654_v49 = vmul.f32 %v1345_v39, %v653_v57  ;;  %v765_v61 = vsel %vm85_vm0, %v650_v58, 0 }
 0x1f0   :  { %v1782_v62 = vand.u32 4294901760, %v765_v61 }
 0x1f1   :  { %v655_v63 = vadd.f32 %v1345_v39, %v654_v49 }
 0x1f2   :  { %v1347_v0 = vpop.eup %1346  ;;  %934 = vmatmul.f32.vlgmr.msrb.gmra.mxu3 %v1782_v62  ;;  %v813_v2 = vsub.f32 %v765_v61, %v1782_v62 }
 0x1f3   :  { %v659_v56 = vsel %vm658_vm7, %v1345_v39, %v655_v63  ;;  %v667_v17 = vmul.f32 %v1347_v0, %v620_v51  ;;  %v623_v7 = vpop.xlane.xlu2 %622  ;;  %vm672_vm9 = vweird.f32 %v1347_v0 }
 0x1f4   :  { %v664_v8 = vsel %vm661_vm8, %v663_v1, %v659_v56  ;;  %1348 = vrcp.f32 %v623_v7  ;;  %1000 = vmatmul.f32.vlgmr.msra.gmra.mxu0 %v813_v2  ;;  %v814_v14 = vand.u32 4294901760, %v813_v2  ;;  %vm673_vm11 = vmor %vm671_vm10, %vm672_vm9  ;;  %v690_v31 = vand.u32 2147483647, %v623_v7 }
 0x1f5   :  { %v668_v12 = vsub.f32 1.0, %v667_v17  ;;  %v665_v55 = vmul.f32 %v1682_v20, %v664_v8  ;;  %v692_v21 = vand.u32 2147483648, %v623_v7  ;;  %vm686_vm14 = vweird.f32 %v623_v7 }
 0x1f6   :  { %1066 = vmatmul.f32.vlgmr.msra.gmra.mxu1 %v814_v14  ;;  %v815_v3 = vsub.f32 %v813_v2, %v814_v14  ;;  %vm691_vm1 = vcmp.eq.f32.partialorder %v690_v31, 8.507059e+37 }
 0x1f7   :  { %v669_v24 = vmul.f32 %v1347_v0, %v668_v12  ;;  %v768_v4 = vsel %vm85_vm0, %v665_v55, 0  ;;  %v693_v42 = vor.u32 1.1754944e-38, %v692_v21 }
 0x1f8   :  { %v1788_v5 = vand.u32 4294901760, %v768_v4  ;;  %v816_v19 = vand.u32 4294901760, %v815_v3 }
 0x1f9   :  { %v670_v15 = vadd.f32 %v1347_v0, %v669_v24 }
 0x1fa   :  { %v1349_v9 = vpop.eup %1348  ;;  %938 = vmatmul.f32.gmra.mxu3 %v1788_v5  ;;  %v821_v20 = vsub.f32 %v768_v4, %v1788_v5  ;;  %817 = vmatmul.f32.vlgmr.msrb.gmra.mxu2 %v816_v19 }
 0x1fb   :  { %v674_v13 = vsel %vm673_vm11, %v1347_v0, %v670_v15  ;;  %v682_v25 = vmul.f32 %v1349_v9, %v623_v7  ;;  %v626_v22 = vpop.xlane.xlu0 %625  ;;  %vm687_vm13 = vweird.f32 %v1349_v9 }
 0x1fc   :  { %v679_v26 = vsel %vm676_vm12, %v678_v10, %v674_v13  ;;  %1350 = vrcp.f32 %v626_v22  ;;  %1005 = vmatmul.f32.gmra.mxu0 %v821_v20  ;;  %v822_v29 = vand.u32 4294901760, %v821_v20  ;;  %vm688_vm15 = vmor %vm686_vm14, %vm687_vm13  ;;  %v705_v46 = vand.u32 2147483647, %v626_v22 }
 0x1fd   :  { %v683_v27 = vsub.f32 1.0, %v682_v25  ;;  %v680_v30 = vmul.f32 %v1687_v11, %v679_v26  ;;  %v707_v47 = vand.u32 2147483648, %v626_v22  ;;  %vm701_vm3 = vweird.f32 %v626_v22 }
 0x1fe   :  { %1072 = vmatmul.f32.gmra.mxu1 %v822_v29  ;;  %v823_v33 = vsub.f32 %v821_v20, %v822_v29  ;;  %vm706_vm5 = vcmp.eq.f32.partialorder %v705_v46, 8.507059e+37 }
 0x1ff   :  { %v684_v32 = vmul.f32 %v1349_v9, %v683_v27  ;;  %v771_v34 = vsel %vm85_vm0, %v680_v30, 0  ;;  %v708_v53 = vor.u32 1.1754944e-38, %v707_v47 }
 0x200   :  { %v1794_v38 = vand.u32 4294901760, %v771_v34  ;;  %v824_v28 = vand.u32 4294901760, %v823_v33 }
 0x201   :  { %v685_v40 = vadd.f32 %v1349_v9, %v684_v32 }
 0x202   :  { %v1351_v41 = vpop.eup %1350  ;;  %942 = vmatmul.f32.gmra.mxu3 %v1794_v38  ;;  %v829_v11 = vsub.f32 %v771_v34, %v1794_v38  ;;  %825 = vmatmul.f32.gmra.mxu2 %v824_v28 }
 0x203   :  { %v689_v35 = vsel %vm688_vm15, %v1349_v9, %v685_v40  ;;  %v697_v43 = vmul.f32 %v1351_v41, %v626_v22  ;;  %v629_v36 = vpop.xlane.xlu1 %628  ;;  %vm702_vm2 = vweird.f32 %v1351_v41 }
 0x204   :  { %v694_v44 = vsel %vm691_vm1, %v693_v42, %v689_v35  ;;  %1352 = vrcp.f32 %v629_v36  ;;  %1010 = vmatmul.f32.gmra.mxu0 %v829_v11  ;;  %v830_v45 = vand.u32 4294901760, %v829_v11  ;;  %vm703_vm4 = vmor %vm701_vm3, %vm702_vm2  ;;  %v720_v7 = vand.u32 2147483647, %v629_v36 }
 0x205   :  { %v698_v37 = vsub.f32 1.0, %v697_v43  ;;  %v695_v39 = vmul.f32 %v1691_v18, %v694_v44  ;;  %v722_v8 = vand.u32 2147483648, %v629_v36  ;;  %vm716_vm7 = vweird.f32 %v629_v36 }
 0x206   :  { %1078 = vmatmul.f32.gmra.mxu1 %v830_v45  ;;  %v831_v51 = vsub.f32 %v829_v11, %v830_v45  ;;  %vm721_vm9 = vcmp.eq.f32.partialorder %v720_v7, 8.507059e+37  ;;  %vm1305_vm3 = vcmask 531464  }
 0x207   :  { %v699_v50 = vmul.f32 %v1351_v41, %v698_v37  ;;  %v774_v54 = vsel %vm85_vm0, %v695_v39, 0  ;;  %v723_v4 = vor.u32 1.1754944e-38, %v722_v8 }
 0x208   :  { %v1800_v57 = vand.u32 4294901760, %v774_v54  ;;  %v832_v59 = vand.u32 4294901760, %v831_v51 }
 0x209   :  { %v700_v58 = vadd.f32 %v1351_v41, %v699_v50 }
 0x20a   :  { %v1353_v49 = vpop.eup %1352  ;;  %946 = vmatmul.f32.gmra.mxu3 %v1800_v57  ;;  %v837_v18 = vsub.f32 %v774_v54, %v1800_v57  ;;  %833 = vmatmul.f32.gmra.mxu2 %v832_v59 }
 0x20b   :  { %v704_v61 = vsel %vm703_vm4, %v1351_v41, %v700_v58  ;;  %v712_v63 = vmul.f32 %v1353_v49, %v629_v36  ;;  %v632_v0 = vpop.xlane.xlu2 %631  ;;  %vm717_vm6 = vweird.f32 %v1353_v49  ;;  %vm1254_vm4 = vcmask 533504  }
 0x20c   :  { %v709_v1 = vsel %vm706_vm5, %v708_v53, %v704_v61  ;;  %1354 = vrcp.f32 %v632_v0  ;;  %1015 = vmatmul.f32.gmra.mxu0 %v837_v18  ;;  %v838_v56 = vand.u32 4294901760, %v837_v18  ;;  %vm718_vm8 = vmor %vm716_vm7, %vm717_vm6  ;;  %v735_v22 = vand.u32 2147483647, %v632_v0 }
 0x20d   :  { %v713_v2 = vsub.f32 1.0, %v712_v63  ;;  %v710_v17 = vmul.f32 %v1723_v48, %v709_v1  ;;  %v737_v26 = vand.u32 2147483648, %v632_v0  ;;  %vm731_vm11 = vweird.f32 %v632_v0 }
 0x20e   :  { %1084 = vmatmul.f32.gmra.mxu1 %v838_v56  ;;  %v839_v14 = vsub.f32 %v837_v18, %v838_v56  ;;  %vm736_vm13 = vcmp.eq.f32.partialorder %v735_v22, 8.507059e+37 }
 0x20f   :  { %v714_v12 = vmul.f32 %v1353_v49, %v713_v2  ;;  %v777_v55 = vsel %vm85_vm0, %v710_v17, 0  ;;  %v738_v34 = vor.u32 1.1754944e-38, %v737_v26 }
 0x210   :  { %v1806_v60 = vand.u32 4294901760, %v777_v55  ;;  %v840_v24 = vand.u32 4294901760, %v839_v14 }
 0x211   :  { %v715_v23 = vadd.f32 %v1353_v49, %v714_v12 }
 0x212   :  { %v1355_v3 = vpop.eup %1354  ;;  %950 = vmatmul.f32.gmra.mxu3 %v1806_v60  ;;  %v845_v48 = vsub.f32 %v777_v55, %v1806_v60  ;;  %841 = vmatmul.f32.gmra.mxu2 %v840_v24 }
 0x213   :  { %v719_v15 = vsel %vm718_vm8, %v1353_v49, %v715_v23  ;;  %v727_v19 = vmul.f32 %v1355_v3, %v632_v0  ;;  %v635_v9 = vpop.xlane.xlu0 %634  ;;  %vm732_vm10 = vweird.f32 %v1355_v3 }
 0x214   :  { %v724_v10 = vsel %vm721_vm9, %v723_v4, %v719_v15  ;;  %1356 = vrcp.f32 %v635_v9  ;;  %1020 = vmatmul.f32.gmra.mxu0 %v845_v48  ;;  %v846_v13 = vand.u32 4294901760, %v845_v48  ;;  %vm733_vm12 = vmor %vm731_vm11, %vm732_vm10  ;;  %v752_v43 = vand.u32 2147483648, %v635_v9 }
 0x215   :  { %v728_v20 = vsub.f32 1.0, %v727_v19  ;;  %v725_v25 = vmul.f32 %v1753_v6, %v724_v10  ;;  %v750_v37 = vand.u32 2147483647, %v635_v9  ;;  %vm746_vm15 = vweird.f32 %v635_v9 }
 0x216   :  { %1090 = vmatmul.f32.gmra.mxu1 %v846_v13  ;;  %v847_v29 = vsub.f32 %v845_v48, %v846_v13  ;;  %v753_v50 = vor.u32 1.1754944e-38, %v752_v43 }
 0x217   :  { %v729_v27 = vmul.f32 %v1355_v3, %v728_v20  ;;  %v780_v30 = vsel %vm85_vm0, %v725_v25, 0  ;;  %vm751_vm2 = vcmp.eq.f32.partialorder %v750_v37, 8.507059e+37 }
 0x218   :  { %v1812_v31 = vand.u32 4294901760, %v780_v30  ;;  %v848_v32 = vand.u32 4294901760, %v847_v29 }
 0x219   :  { %v730_v21 = vadd.f32 %v1355_v3, %v729_v27 }
 0x21a   :  { %v1357_v33 = vpop.eup %1356  ;;  %954 = vmatmul.f32.gmra.mxu3 %v1812_v31  ;;  %v853_v6 = vsub.f32 %v780_v30, %v1812_v31  ;;  %849 = vmatmul.f32.gmra.mxu2 %v848_v32  ;;  %v1843_v30 = vstv %s1954_s0 }
 0x21b   :  { %v734_v40 = vsel %vm733_vm12, %v1355_v3, %v730_v21  ;;  %v742_v28 = vmul.f32 %v1357_v33, %v635_v9  ;;  %vm747_vm14 = vweird.f32 %v1357_v33 }
 0x21c   :  { %v739_v41 = vsel %vm736_vm13, %v738_v34, %v734_v40  ;;  %1025 = vmatmul.f32.gmra.mxu0 %v853_v6  ;;  %v854_v42 = vand.u32 4294901760, %v853_v6  ;;  %vm748_vm1 = vmor %vm746_vm15, %vm747_vm14 }
 0x21d   :  { %v743_v11 = vsub.f32 1.0, %v742_v28  ;;  %v740_v35 = vmul.f32 %v1758_v52, %v739_v41 }
 0x21e   :  { %v855_v36 = vsub.f32 %v853_v6, %v854_v42  ;;  %1096 = vmatmul.f32.gmra.mxu1 %v854_v42 }
 0x21f   :  { %v744_v44 = vmul.f32 %v1357_v33, %v743_v11  ;;  %v783_v45 = vsel %vm85_vm0, %v740_v35, 0 }
 0x220   :  { %v856_v39 = vand.u32 4294901760, %v855_v36  ;;  %v860_v46 = vand.u32 4294901760, %v783_v45 }
 0x221   :  { %v745_v47 = vadd.f32 %v1357_v33, %v744_v44 }
 0x222   :  { %958 = vmatmul.f32.gmra.mxu3 %v860_v46  ;;  %v861_v51 = vsub.f32 %v783_v45, %v860_v46  ;;  %857 = vmatmul.f32.gmra.mxu2 %v856_v39 }
 0x223   :  { %v749_v54 = vsel %vm748_vm1, %v1357_v33, %v745_v47  ;;  %v1848_v33 = vstv %s1955_s1 }
 0x224   :  { %v754_v52 = vsel %vm751_vm2, %v753_v50, %v749_v54  ;;  %1030 = vmatmul.f32.gmra.mxu0 %v861_v51  ;;  %v862_v58 = vand.u32 4294901760, %v861_v51  ;;  %1255 = vst.msk [vmem:[%s1959_s5 + $0x40] sm:$0x3] %vm1254_vm4, %v1848_v33 }
 0x225   :  { %v755_v59 = vmul.f32 %v1762_v16, %v754_v52 }
 0x226   :  { %v863_v49 = vsub.f32 %v861_v51, %v862_v58  ;;  %1102 = vmatmul.f32.gmra.mxu1 %v862_v58 }
 0x227   :  { %v786_v53 = vsel %vm85_vm0, %v755_v59, 0  ;;  %vm1245_vm0 = vcmask 539648  }
 0x228   :  { %v864_v18 = vand.u32 4294901760, %v863_v49  ;;  %v868_v61 = vand.u32 4294901760, %v786_v53  ;;  %1247 = vst.msk [vmem:[%s1959_s5 + $0x8] sm:$0xff] %vm1245_vm0, %v1848_v33 }
 0x229   :  { %1248 = vst.msk [vmem:[%s1959_s5 + $0x10] sm:$0xff] %vm1245_vm0, %v1848_v33 }
 0x22a   :  { %962 = vmatmul.f32.gmra.mxu3 %v868_v61  ;;  %v869_v63 = vsub.f32 %v786_v53, %v868_v61  ;;  %865 = vmatmul.f32.gmra.mxu2 %v864_v18  ;;  %1246 = vst.msk [vmem:[%s1959_s5] sm:$0xff] %vm1245_vm0, %v1848_v33 }
 0x22b   :  { %1249 = vst.msk [vmem:[%s1959_s5 + $0x18] sm:$0xff] %vm1245_vm0, %v1848_v33 }
 0x22c   :  { %1035 = vmatmul.f32.gmra.mxu0 %v869_v63  ;;  %v870_v0 = vand.u32 4294901760, %v869_v63  ;;  %1250 = vst.msk [vmem:[%s1959_s5 + $0x20] sm:$0xff] %vm1245_vm0, %v1848_v33 }
 0x22d   :  { %1251 = vst.msk [vmem:[%s1959_s5 + $0x28] sm:$0xff] %vm1245_vm0, %v1848_v33 }
 0x22e   :  { %v871_v1 = vsub.f32 %v869_v63, %v870_v0  ;;  %1108 = vmatmul.f32.gmra.mxu1 %v870_v0  ;;  %1252 = vst.msk [vmem:[%s1959_s5 + $0x30] sm:$0xff] %vm1245_vm0, %v1848_v33 }
 0x22f   :  { %1253 = vst.msk [vmem:[%s1959_s5 + $0x38] sm:$0xff] %vm1245_vm0, %v1848_v33 }
 0x230   :  { %v872_v2 = vand.u32 4294901760, %v871_v1 }
 0x232   :  { %1210 = vmatmul.f32.vlgmr.msra.gmra.mxu3 %v1782_v62  ;;  %873 = vmatmul.f32.gmra.mxu2 %v872_v2 }
 0x23a   :  { %1214 = vmatmul.f32.gmra.mxu3 %v1788_v5  ;;  %1153 = vmatmul.f32.vlgmr.msra.gmra.mxu2 %v1782_v62 }
 0x242   :  { %1218 = vmatmul.f32.gmra.mxu3 %v1794_v38  ;;  %1157 = vmatmul.f32.gmra.mxu2 %v1788_v5 }
 0x24a   :  { %1222 = vmatmul.f32.gmra.mxu3 %v1800_v57  ;;  %1161 = vmatmul.f32.gmra.mxu2 %v1794_v38 }
 0x252   :  { %1226 = vmatmul.f32.gmra.mxu3 %v1806_v60  ;;  %1165 = vmatmul.f32.gmra.mxu2 %v1800_v57 }
 0x25a   :  { %1230 = vmatmul.f32.gmra.mxu3 %v1812_v31  ;;  %1169 = vmatmul.f32.gmra.mxu2 %v1806_v60 }
 0x262   :  { %1234 = vmatmul.f32.gmra.mxu3 %v860_v46  ;;  %1173 = vmatmul.f32.gmra.mxu2 %v1812_v31 }
 0x26a   :  { %1238 = vmatmul.f32.gmra.mxu3 %v868_v61  ;;  %1177 = vmatmul.f32.gmra.mxu2 %v860_v46 }
 0x271   :  { %v1001_v23 = vpop.f32.mrf.mxu0 }
 0x272   :  { %1181 = vmatmul.f32.gmra.mxu2 %v868_v61 }
 0x273   :  { %v1067_v3 = vpop.f32.mrf.mxu1 }
 0x275   :  { %v935_v16 = vpop.f32.mrf.mxu3 }
 0x279   :  { %v1006_v48 = vpop.f32.mrf.mxu0 }
 0x27b   :  { %v1073_v10 = vpop.f32.mrf.mxu1 }
 0x27d   :  { %v939_v62 = vpop.f32.mrf.mxu3  ;;  %v818_v5 = vpop.f32.mrf.mxu2 }
 0x27e   :  { %v936_v15 = vadd.f32 %v935_v16, %v818_v5 }
 0x280   :  { %v1002_v20 = vadd.f32 %v1001_v23, %v936_v15 }
 0x281   :  { %v1011_v26 = vpop.f32.mrf.mxu0 }
 0x282   :  { %v1068_v25 = vadd.f32 %v1067_v3, %v1002_v20 }
 0x283   :  { %v1079_v32 = vpop.f32.mrf.mxu1 }
 0x285   :  { %v943_v56 = vpop.f32.mrf.mxu3  ;;  %v826_v17 = vpop.f32.mrf.mxu2 }
 0x286   :  { %v940_v13 = vadd.f32 %v939_v62, %v826_v17 }
 0x288   :  { %v1007_v31 = vadd.f32 %v1006_v48, %v940_v13 }
 0x289   :  { %v1016_v35 = vpop.f32.mrf.mxu0 }
 0x28a   :  { %v1074_v40 = vadd.f32 %v1073_v10, %v1007_v31 }
 0x28b   :  { %v1085_v37 = vpop.f32.mrf.mxu1 }
 0x28d   :  { %v947_v38 = vpop.f32.mrf.mxu3  ;;  %v834_v7 = vpop.f32.mrf.mxu2 }
 0x28e   :  { %v944_v6 = vadd.f32 %v943_v56, %v834_v7 }
 0x290   :  { %v1012_v43 = vadd.f32 %v1011_v26, %v944_v6 }
 0x291   :  { %v1021_v58 = vpop.f32.mrf.mxu0 }
 0x292   :  { %v1080_v39 = vadd.f32 %v1079_v32, %v1012_v43 }
 0x293   :  { %v1091_v61 = vpop.f32.mrf.mxu1 }
 0x295   :  { %v951_v8 = vpop.f32.mrf.mxu3  ;;  %v842_v12 = vpop.f32.mrf.mxu2 }
 0x296   :  { %v948_v45 = vadd.f32 %v947_v38, %v842_v12 }
 0x298   :  { %v1017_v54 = vadd.f32 %v1016_v35, %v948_v45 }
 0x299   :  { %v1026_v5 = vpop.f32.mrf.mxu0 }
 0x29a   :  { %v1086_v53 = vadd.f32 %v1085_v37, %v1017_v54 }
 0x29b   :  { %v1097_v12 = vpop.f32.mrf.mxu1 }
 0x29d   :  { %v955_v57 = vpop.f32.mrf.mxu3  ;;  %v850_v14 = vpop.f32.mrf.mxu2 }
 0x29e   :  { %v952_v49 = vadd.f32 %v951_v8, %v850_v14 }
 0x2a0   :  { %v1022_v1 = vadd.f32 %v1021_v58, %v952_v49 }
 0x2a2   :  { %v1092_v17 = vadd.f32 %v1091_v61, %v1022_v1 }
 0x2a3   :  { %v1103_v13 = vpop.f32.mrf.mxu1 }
 0x2a5   :  { %v1832_v55 = vpop.f32.mrf.mxu3  ;;  %v858_v60 = vpop.f32.mrf.mxu2 }
 0x2a6   :  { %v956_v56 = vadd.f32 %v955_v57, %v858_v60 }
 0x2a8   :  { %v1027_v14 = vadd.f32 %v1026_v5, %v956_v56 }
 0x2aa   :  { %v1098_v48 = vadd.f32 %v1097_v12, %v1027_v14 }
 0x2ad   :  { %v1834_v24 = vpop.f32.mrf.mxu3  ;;  %v1836_v4 = vpop.f32.mrf.mxu2 }
 0x2ae   :  { %v960_v3 = vadd.f32 %v1832_v55, %v1836_v4 }
 0x2b5   :  { %v1211_v19 = vpop.f32.mrf.mxu3  ;;  %v1838_v9 = vpop.f32.mrf.mxu2 }
 0x2bd   :  { %v1215_v22 = vpop.f32.mrf.mxu3  ;;  %v1154_v27 = vpop.f32.mrf.mxu2 }
 0x2be   :  { %v1155_v29 = vadd.f32 %v1154_v27, %v1068_v25 }
 0x2c0   :  { %v1212_v21 = vadd.f32 %v1211_v19, %v1155_v29  ;;  %v1031_v19 = vpop.f32.mrf.mxu0 }
 0x2c1   :  { %v1032_v55 = vadd.f32 %v1031_v19, %v960_v3 }
 0x2c2   :  { %v1257_v34 = vmul.f32 %v1843_v30, %v1212_v21 }
 0x2c3   :  { %v1104_v26 = vadd.f32 %v1103_v13, %v1032_v55 }
 0x2c4   :  { %v1265_v28 = vadd.f32 %v1257_v34, %v1848_v33 }
 0x2c5   :  { %v1158_v41 = vpop.f32.mrf.mxu2  ;;  %v1219_v42 = vpop.f32.mrf.mxu3 }
 0x2c6   :  { %v1159_v11 = vadd.f32 %v1158_v41, %v1074_v40  ;;  %1281 = vrot.lane.b32.xlu1 %v1265_v28, %s1439_s11  ;;  %v1109_v28 = vpop.f32.mrf.mxu1 }
 0x2c8   :  { %v1216_v36 = vadd.f32 %v1215_v22, %v1159_v11  ;;  %v964_v22 = vadd.f32 %v1834_v24, %v1838_v9  ;;  %v1036_v32 = vpop.f32.mrf.mxu0 }
 0x2ca   :  { %v1258_v44 = vmul.f32 %v1843_v30, %v1216_v36  ;;  %v1037_v34 = vadd.f32 %v1036_v32, %v964_v22 }
 0x2cc   :  { %v1266_v46 = vadd.f32 %v1258_v44, %v1848_v33  ;;  %v1110_v41 = vadd.f32 %v1109_v28, %v1037_v34 }
 0x2cd   :  { %v1162_v47 = vpop.f32.mrf.mxu2  ;;  %v1223_v51 = vpop.f32.mrf.mxu3 }
 0x2ce   :  { %v1163_v50 = vadd.f32 %v1162_v47, %v1080_v39  ;;  %1283 = vrot.lane.b32.xlu2 %v1266_v46, %s1439_s11 }
 0x2d0   :  { %v1220_v52 = vadd.f32 %v1219_v42, %v1163_v50 }
 0x2d2   :  { %v1259_v59 = vmul.f32 %v1843_v30, %v1220_v52 }
 0x2d4   :  { %v1267_v18 = vadd.f32 %v1259_v59, %v1848_v33 }
 0x2d5   :  { %v1166_v63 = vpop.f32.mrf.mxu2  ;;  %v1227_v16 = vpop.f32.mrf.mxu3 }
 0x2d6   :  { %v1167_v0 = vadd.f32 %v1166_v63, %v1086_v53  ;;  %1285 = vrot.lane.b32.xlu0 %v1267_v18, %s1439_s11 }
 0x2d8   :  { %v1224_v2 = vadd.f32 %v1223_v51, %v1167_v0 }
 0x2da   :  { %v1260_v62 = vmul.f32 %v1843_v30, %v1224_v2 }
 0x2dc   :  { %v1268_v38 = vadd.f32 %v1260_v62, %v1848_v33 }
 0x2dd   :  { %v1170_v7 = vpop.f32.mrf.mxu2  ;;  %v1231_v60 = vpop.f32.mrf.mxu3 }
 0x2de   :  { %v1171_v8 = vadd.f32 %v1170_v7, %v1092_v17  ;;  %1287 = vrot.lane.b32.xlu2 %v1268_v38, %s1439_s11 }
 0x2e0   :  { %v1228_v23 = vadd.f32 %v1227_v16, %v1171_v8 }
 0x2e2   :  { %v1261_v57 = vmul.f32 %v1843_v30, %v1228_v23 }
 0x2e4   :  { %v1269_v15 = vadd.f32 %v1261_v57, %v1848_v33 }
 0x2e5   :  { %v1174_v10 = vpop.f32.mrf.mxu2  ;;  %v1235_v29 = vpop.f32.mrf.mxu3 }
 0x2e6   :  { %v1175_v20 = vadd.f32 %v1174_v10, %v1098_v48  ;;  %1289 = vrot.lane.b32.xlu1 %v1269_v15, %s1439_s11 }
 0x2e8   :  { %v1232_v4 = vadd.f32 %v1231_v60, %v1175_v20 }
 0x2ea   :  { %v1262_v25 = vmul.f32 %v1843_v30, %v1232_v4 }
 0x2ec   :  { %v1270_v27 = vadd.f32 %v1262_v25, %v1848_v33 }
 0x2ed   :  { %v1178_v31 = vpop.f32.mrf.mxu2  ;;  %v1239_v24 = vpop.f32.mrf.mxu3 }
 0x2ee   :  { %v1179_v21 = vadd.f32 %v1178_v31, %v1104_v26  ;;  %1291 = vrot.lane.b32.xlu0 %v1270_v27, %s1439_s11 }
 0x2f0   :  { %v1236_v6 = vadd.f32 %v1235_v29, %v1179_v21 }
 0x2f2   :  { %v1263_v40 = vmul.f32 %v1843_v30, %v1236_v6 }
 0x2f4   :  { %v1271_v42 = vadd.f32 %v1263_v40, %v1848_v33 }
 0x2f5   :  { %v1182_v11 = vpop.f32.mrf.mxu2 }
 0x2f6   :  { %v1183_v35 = vadd.f32 %v1182_v11, %v1110_v41  ;;  %1293 = vrot.lane.b32.xlu2 %v1271_v42, %s1439_s11 }
 0x2f8   :  { %v1240_v9 = vadd.f32 %v1239_v24, %v1183_v35 }
 0x2fa   :  { %v1264_v43 = vmul.f32 %v1843_v30, %v1240_v9 }
 0x2fc   :  { %v1272_v36 = vadd.f32 %v1264_v43, %v1848_v33 }
 0x2fe   :  { %1295 = vrot.lane.b32.xlu1 %v1272_v36, %s1439_s11 }
 0x328   :  { %v1284_v44 = vpop.permute.xlu2 %1283 }
 0x329   :  { %1307 = vst.msk [vmem:[%s1959_s5 + $0x9] sm:$0xff] %vm1305_vm3, %v1284_v44 }
 0x338   :  { %v1288_v37 = vpop.permute.xlu2 %1287  ;;  %v1282_v45 = vpop.permute.xlu1 %1281 }
 0x339   :  { %1309 = vst.msk [vmem:[%s1959_s5 + $0x19] sm:$0xff] %vm1305_vm3, %v1288_v37 }
 0x33a   :  { %1306 = vst.msk [vmem:[%s1959_s5 + $0x1] sm:$0xff] %vm1305_vm3, %v1282_v45 }
 0x348   :  { %v1286_v30 = vpop.permute.xlu0 %1285 }
 0x349   :  { %1308 = vst.msk [vmem:[%s1959_s5 + $0x11] sm:$0xff] %vm1305_vm3, %v1286_v30 }
 0x350   :  { %v1294_v39 = vpop.permute.xlu2 %1293 }
 0x351   :  { %1312 = vst.msk [vmem:[%s1959_s5 + $0x31] sm:$0xff] %vm1305_vm3, %v1294_v39 }
 0x358   :  { %v1290_v46 = vpop.permute.xlu1 %1289 }
 0x359   :  { %1310 = vst.msk [vmem:[%s1959_s5 + $0x21] sm:$0xff] %vm1305_vm3, %v1290_v46 }
 0x360   :  { %v1292_v47 = vpop.permute.xlu0 %1291 }
 0x361   :  { %1311 = vst.msk [vmem:[%s1959_s5 + $0x29] sm:$0xff] %vm1305_vm3, %v1292_v47 }
 0x370   :  { %v1296_v33 = vpop.permute.xlu1 %1295 }
 0x371   :  { %1313 = vst.msk [vmem:[%s1959_s5 + $0x39] sm:$0xff] %vm1305_vm3, %v1296_v33 }
 0x372   :  { %1318 = vsyncpa [#allocation5], 1 }
 0x373   :  { %1319 = vsyncpa [#allocation7], 1 }

</bundles_post_ra>
